<compile_context>
chip_gen: v5e
topology: v5e:2x2
jax: 0.10.0
libtpu: 0.0.40
codegen_flags: <defaults>
</compile_context>

<pallas_src>
import functools

import jax
import jax.numpy as jnp
from jax import lax
from jax.experimental import pallas as pl
from jax.experimental.pallas import tpu as pltpu

_INPUT_LAYER = 128
_HIDDEN_1 = 256
_BN_EPS = 1e-5


def _round_up(n, m):
    return ((n + m - 1) // m) * m


def _actor_kernel(x_ref, w1_ref, w2_ref, w3_ref, vec_ref, o_ref):
    h1_dim = w1_ref.shape[1]   # 128
    h2_dim = w2_ref.shape[1]   # 256
    a_pad = w3_ref.shape[1]    # action_size rounded up to a multiple of 128

    # Static Ref-level slices of the packed per-feature vectors (free
    # addressing, no full-tile load + value slice).
    gamma = vec_ref[0:1, :h1_dim]    # f32 [1, 128]
    beta = vec_ref[1:2, :h1_dim]     # f32 [1, 128]
    b2 = vec_ref[2:3, :h2_dim]       # f32 [1, 256]
    b3 = vec_ref[3:4, :a_pad]        # f32 [1, a_pad]

    # fc1 in f32 on the raw (unpadded) state; the tiny contraction dim makes
    # the f32 MXU cost negligible and avoids any wrapper-side pad/cast op.
    # fc1 bias is intentionally omitted: it cancels against the training-mode
    # BatchNorm mean subtraction (exact in exact arithmetic; f32 rounding
    # differences are negligible).
    h1 = jnp.dot(x_ref[...], w1_ref[...], preferred_element_type=jnp.float32)

    # BatchNorm1d, training mode (biased batch statistics), f32 math.
    # Fold affine into a single per-feature scale/shift; issue the two
    # sublane reductions back-to-back (E[x^2] - E[x]^2).
    inv_b = 1.0 / float(h1.shape[0])
    s1 = jnp.sum(h1, axis=0, keepdims=True)
    s2 = jnp.sum(h1 * h1, axis=0, keepdims=True)
    mean = s1 * inv_b
    var = jnp.maximum(s2 * inv_b - mean * mean, 0.0)
    scale = gamma * lax.rsqrt(var + _BN_EPS)     # [1, 128]
    shift = beta - mean * scale                  # [1, 128]
    h1 = h1 * scale + shift

    # ReLU -> fc2 (bf16 MXU, f32 accumulate) -> ReLU
    h1 = jnp.maximum(h1, 0.0).astype(jnp.bfloat16)
    h2 = jnp.dot(h1, w2_ref[...], preferred_element_type=jnp.float32) + b2
    h2 = jnp.maximum(h2, 0.0).astype(jnp.bfloat16)

    # fc3 (lane-padded to a_pad) -> tanh; full-lane unmasked store.
    h3 = jnp.dot(h2, w3_ref[...], preferred_element_type=jnp.float32) + b3
    o_ref[...] = jnp.tanh(h3)


@functools.partial(jax.jit, static_argnames=("action_size",))
def actor_forward(state, kparams, *, action_size):
    """state: [B, state_size] float32 -> actions [B, action_size] in (-1, 1)."""
    b, state_size = state.shape
    a_pad = kparams["w3"].shape[1]

    # VMEM budget from actual operand + intermediate sizes with ~2x headroom,
    # floored at the smallest default scoped limit (16 MiB) and capped at
    # 48 MiB so we never request all of v7x's 64 MiB physical VMEM.
    weight_bytes = sum(int(v.size) * v.dtype.itemsize for v in kparams.values())
    act_bytes = b * (state_size + _INPUT_LAYER + _HIDDEN_1 + a_pad) * 4
    vmem_limit = min(max(2 * (weight_bytes + act_bytes), 16 * 1024 * 1024),
                     48 * 1024 * 1024)

    out_pad = pl.pallas_call(
        _actor_kernel,
        out_shape=jax.ShapeDtypeStruct((b, a_pad), jnp.float32),
        # Small model: every operand fits in VMEM, so use whole-array blocks
        # (no grid) and keep the fused MLP in one kernel invocation.
        in_specs=[pl.BlockSpec(memory_space=pltpu.MemorySpace.VMEM)] * 5,
        out_specs=pl.BlockSpec(memory_space=pltpu.MemorySpace.VMEM),
        compiler_params=pltpu.CompilerParams(vmem_limit_bytes=int(vmem_limit)),
    )(state, kparams["w1"], kparams["w2"], kparams["w3"], kparams["vec"])

    # Consumers that tolerate a lane-padded action vector can take out_pad
    # directly and skip this slice (one fewer XLA dispatch).
    return out_pad[:, :action_size]


def init_actor_params(key, state_size, action_size):
    """Deterministic init mirroring Actor.reset_parameters() (f32, untransformed)."""
    k1, k2, k3, kb1, kb2, kb3 = jax.random.split(key, 6)

    # hidden_init uses weight.size()[0] == out_features as "fan_in" (as in the
    # original code), so lim1 = 1/sqrt(128), lim2 = 1/sqrt(256).
    lim1 = 1.0 / jnp.sqrt(float(_INPUT_LAYER))
    lim2 = 1.0 / jnp.sqrt(float(_HIDDEN_1))

    # Weights stored transposed: [in_features, out_features].
    w1 = jax.random.uniform(k1, (state_size, _INPUT_LAYER), jnp.float32, -lim1, lim1)
    w2 = jax.random.uniform(k2, (_INPUT_LAYER, _HIDDEN_1), jnp.float32, -lim2, lim2)
    w3 = jax.random.uniform(k3, (_HIDDEN_1, action_size), jnp.float32, -0.003, 0.003)

    # Biases keep the default nn.Linear init: U(-1/sqrt(in_features), +).
    bl1 = 1.0 / jnp.sqrt(float(state_size))
    bl2 = 1.0 / jnp.sqrt(float(_INPUT_LAYER))
    bl3 = 1.0 / jnp.sqrt(float(_HIDDEN_1))
    b1 = jax.random.uniform(kb1, (1, _INPUT_LAYER), jnp.float32, -bl1, bl1)
    b2 = jax.random.uniform(kb2, (1, _HIDDEN_1), jnp.float32, -bl2, bl2)
    b3 = jax.random.uniform(kb3, (1, action_size), jnp.float32, -bl3, bl3)

    # BatchNorm1d default affine params.
    bn_gamma = jnp.ones((1, _INPUT_LAYER), jnp.float32)
    bn_beta = jnp.zeros((1, _INPUT_LAYER), jnp.float32)

    return {"w1": w1, "b1": b1, "w2": w2, "b2": b2, "w3": w3, "b3": b3,
            "bn_gamma": bn_gamma, "bn_beta": bn_beta}


def prepare_actor_params(raw):
    """One-time conversion of raw params into kernel-ready operands."""
    state_size, h1 = raw["w1"].shape
    h2 = raw["w2"].shape[1]
    action_size = raw["w3"].shape[1]
    a_pad = _round_up(max(action_size, 1), 128)
    vec_w = max(h2, a_pad)

    # fc1 weight stays f32 (tiny contraction dim, feeds BatchNorm);
    # fc2/fc3 weights are bf16, lane-aligned / zero-padded matmul tiles.
    w1 = raw["w1"].astype(jnp.float32)
    w2 = raw["w2"].astype(jnp.bfloat16)
    w3 = jnp.zeros((h2, a_pad), jnp.bfloat16)
    w3 = w3.at[:, :action_size].set(raw["w3"].astype(jnp.bfloat16))

    # Pack the small per-feature vectors into one f32 operand.
    # raw["b1"] is intentionally dropped: the fc1 bias cancels with the
    # training-mode BatchNorm mean subtraction (up to f32 rounding).
    vec = jnp.zeros((4, vec_w), jnp.float32)
    vec = vec.at[0, :h1].set(raw["bn_gamma"].reshape(-1))
    vec = vec.at[1, :h1].set(raw["bn_beta"].reshape(-1))
    vec = vec.at[2, :h2].set(raw["b2"].reshape(-1))
    vec = vec.at[3, :action_size].set(raw["b3"].reshape(-1))

    return {"w1": w1, "w2": w2, "w3": w3, "vec": vec}


if __name__ == "__main__":
    key = jax.random.PRNGKey(0)
    k_params, k_state = jax.random.split(key)

    batch = 8          # >1 so training-mode BatchNorm is well-defined
    state_size = 16
    action_size = 4

    raw_params = init_actor_params(k_params, state_size, action_size)
    kparams = prepare_actor_params(raw_params)
    state = jax.random.normal(k_state, (batch, state_size), jnp.float32)

    actions = actor_forward(state, kparams, action_size=action_size)
    jax.block_until_ready(actions)

    assert actions.shape == (batch, action_size)
    assert bool(jnp.all(jnp.isfinite(actions)))
    assert bool(jnp.all(jnp.abs(actions) <= 1.0))
    print("KERNEL_OK")
</pallas_src>

<mosaic_0001>
module attributes {stable_mosaic.version = 11 : i64} {
  func.func @_actor_kernel(%arg0: memref<8x16xf32, #tpu.memory_space<vmem>>, %arg1: memref<16x128xf32, #tpu.memory_space<vmem>>, %arg2: memref<128x256xbf16, #tpu.memory_space<vmem>>, %arg3: memref<256x128xbf16, #tpu.memory_space<vmem>>, %arg4: memref<4x256xf32, #tpu.memory_space<vmem>>, %arg5: memref<8x128xf32, #tpu.memory_space<vmem>>) attributes {dimension_semantics = [], scalar_prefetch = 0 : i64, scratch_operands = 0 : i64, tpu.core_type = #tpu.core_type<tc>} {
    %c0 = arith.constant 0 : index
    %c0_0 = arith.constant 0 : index
    %0 = vector.load %arg4[%c0, %c0_0] : memref<4x256xf32, #tpu.memory_space<vmem>>, vector<1x128xf32>
    %c1 = arith.constant 1 : index
    %c0_1 = arith.constant 0 : index
    %1 = vector.load %arg4[%c1, %c0_1] : memref<4x256xf32, #tpu.memory_space<vmem>>, vector<1x128xf32>
    %c2 = arith.constant 2 : index
    %c0_2 = arith.constant 0 : index
    %2 = vector.load %arg4[%c2, %c0_2] : memref<4x256xf32, #tpu.memory_space<vmem>>, vector<1x256xf32>
    %c3 = arith.constant 3 : index
    %c0_3 = arith.constant 0 : index
    %3 = vector.load %arg4[%c3, %c0_3] : memref<4x256xf32, #tpu.memory_space<vmem>>, vector<1x128xf32>
    %c0_4 = arith.constant 0 : index
    %c0_5 = arith.constant 0 : index
    %4 = vector.load %arg0[%c0_4, %c0_5] : memref<8x16xf32, #tpu.memory_space<vmem>>, vector<8x16xf32>
    %c0_6 = arith.constant 0 : index
    %c0_7 = arith.constant 0 : index
    %5 = vector.load %arg1[%c0_6, %c0_7] : memref<16x128xf32, #tpu.memory_space<vmem>>, vector<16x128xf32>
    %cst = arith.constant dense<0.000000e+00> : vector<8x128xf32>
    %6 = tpu.matmul %4, %5, %cst {dimension_numbers = #tpu.dot_dimension_numbers<[1], [0], [0], [1], [0, 0, 1, 1], [], []>} : vector<8x16xf32>, vector<16x128xf32>, vector<8x128xf32> -> vector<8x128xf32>
    %cst_8 = arith.constant dense<0.000000e+00> : vector<128xf32>
    %7 = vector.multi_reduction <add>, %6, %cst_8 [0] : vector<8x128xf32> to vector<128xf32>
    %8 = vector.shape_cast %7 : vector<128xf32> to vector<1x128xf32>
    %9 = arith.mulf %6, %6 : vector<8x128xf32>
    %cst_9 = arith.constant dense<0.000000e+00> : vector<128xf32>
    %10 = vector.multi_reduction <add>, %9, %cst_9 [0] : vector<8x128xf32> to vector<128xf32>
    %11 = vector.shape_cast %10 : vector<128xf32> to vector<1x128xf32>
    %cst_10 = arith.constant 1.250000e-01 : f32
    %12 = vector.broadcast %cst_10 : f32 to vector<1x128xf32>
    %13 = arith.mulf %8, %12 : vector<1x128xf32>
    %cst_11 = arith.constant 1.250000e-01 : f32
    %14 = vector.broadcast %cst_11 : f32 to vector<1x128xf32>
    %15 = arith.mulf %11, %14 : vector<1x128xf32>
    %16 = arith.mulf %13, %13 : vector<1x128xf32>
    %17 = arith.subf %15, %16 : vector<1x128xf32>
    %cst_12 = arith.constant 0.000000e+00 : f32
    %18 = vector.broadcast %cst_12 : f32 to vector<1x128xf32>
    %19 = arith.maximumf %17, %18 : vector<1x128xf32>
    %cst_13 = arith.constant 9.99999974E-6 : f32
    %20 = vector.broadcast %cst_13 : f32 to vector<1x128xf32>
    %21 = arith.addf %19, %20 : vector<1x128xf32>
    %22 = math.rsqrt %21 : vector<1x128xf32>
    %23 = arith.mulf %0, %22 : vector<1x128xf32>
    %24 = arith.mulf %13, %23 : vector<1x128xf32>
    %25 = arith.subf %1, %24 : vector<1x128xf32>
    %26 = vector.broadcast %23 : vector<1x128xf32> to vector<8x128xf32>
    %27 = arith.mulf %6, %26 : vector<8x128xf32>
    %28 = vector.broadcast %25 : vector<1x128xf32> to vector<8x128xf32>
    %29 = arith.addf %27, %28 : vector<8x128xf32>
    %cst_14 = arith.constant 0.000000e+00 : f32
    %30 = vector.broadcast %cst_14 : f32 to vector<8x128xf32>
    %31 = arith.maximumf %29, %30 : vector<8x128xf32>
    %32 = arith.truncf %31 : vector<8x128xf32> to vector<8x128xbf16>
    %c0_15 = arith.constant 0 : index
    %c0_16 = arith.constant 0 : index
    %33 = vector.load %arg2[%c0_15, %c0_16] : memref<128x256xbf16, #tpu.memory_space<vmem>>, vector<128x256xbf16>
    %cst_17 = arith.constant dense<0.000000e+00> : vector<8x256xf32>
    %34 = tpu.matmul %32, %33, %cst_17 {dimension_numbers = #tpu.dot_dimension_numbers<[1], [0], [0], [1], [0, 0, 1, 1], [], []>} : vector<8x128xbf16>, vector<128x256xbf16>, vector<8x256xf32> -> vector<8x256xf32>
    %35 = vector.broadcast %2 : vector<1x256xf32> to vector<8x256xf32>
    %36 = arith.addf %34, %35 : vector<8x256xf32>
    %cst_18 = arith.constant 0.000000e+00 : f32
    %37 = vector.broadcast %cst_18 : f32 to vector<8x256xf32>
    %38 = arith.maximumf %36, %37 : vector<8x256xf32>
    %39 = arith.truncf %38 : vector<8x256xf32> to vector<8x256xbf16>
    %c0_19 = arith.constant 0 : index
    %c0_20 = arith.constant 0 : index
    %40 = vector.load %arg3[%c0_19, %c0_20] : memref<256x128xbf16, #tpu.memory_space<vmem>>, vector<256x128xbf16>
    %cst_21 = arith.constant dense<0.000000e+00> : vector<8x128xf32>
    %41 = tpu.matmul %39, %40, %cst_21 {dimension_numbers = #tpu.dot_dimension_numbers<[1], [0], [0], [1], [0, 0, 1, 1], [], []>} : vector<8x256xbf16>, vector<256x128xbf16>, vector<8x128xf32> -> vector<8x128xf32>
    %42 = vector.broadcast %3 : vector<1x128xf32> to vector<8x128xf32>
    %43 = arith.addf %41, %42 : vector<8x128xf32>
    %44 = math.tanh %43 : vector<8x128xf32>
    %c0_22 = arith.constant 0 : index
    %c0_23 = arith.constant 0 : index
    %45 = vector.load %arg5[%c0_22, %c0_23] : memref<8x128xf32, #tpu.memory_space<vmem>>, vector<8x128xf32>
    tpu.vector_store %arg5[%c0_22, %c0_23], %44 {strides = array<i32>} : memref<8x128xf32, #tpu.memory_space<vmem>>, vector<8x128xf32>,
    return
  }
}

</mosaic_0001>

<bundles_post_ra>
// kernel: actor_forward.1
= control target key start
LH: loop header
LB: loop body
LE: loop exit
PB: predicated region body
PF: predicated region fallthrough
CT: control target
= control target key end

     0   :  { %10 = vsyncpa [#allocation3], 0  ;;  %s824_s0 = inlined_call_operand.hbm [shape: f32[8,16], index: 0, kind: input, shape index: {}]   ;;  %s825_s1 = inlined_call_operand.hbm [shape: f32[16,128], index: 1, kind: input, shape index: {}]   ;;  %s826_s2 = inlined_call_operand.hbm [shape: bf16[128,256], index: 2, kind: input, shape index: {}]   ;;  %s827_s3 = inlined_call_operand.hbm [shape: bf16[256,128], index: 3, kind: input, shape index: {}]   ;;  %s828_s4 = inlined_call_operand.hbm [shape: f32[4,256], index: 4, kind: input, shape index: {}]   ;;  %s829_s5 = inlined_call_operand.vmem [shape: f32[8,128], index: 5, kind: output, shape index: {}]  }
   0x1   :  { %11 = vsyncpa [#allocation5], 0  ;;  %s28_s20 = sshll.u32 %s825_s1, 4  ;;  %s29_s20 = int_to_ptr.hbm [resolvable:$true] %s28_s20 }
   0x2   :  { %12 = vsyncpa [#allocation8], 0  ;;  %s760_s21 = smov [#allocation4]   ;;  %s54_s25 = sshll.u32 %s827_s3, 4  ;;  %s55_s25 = int_to_ptr.hbm [resolvable:$true] %s54_s25 }
   0x3   :  { %s30_s22 = sshll.u32 %s760_s21, 4  ;;  %s761_s26 = smov 128   ;;  %s31_s22 = int_to_ptr.vmem [resolvable:$true] %s30_s22 }
   0x4   :  { %s762_s27 = smov 8   ;;  %s763_s28 = smov [#allocation7]  }
   0x5   :  { %36 = dma.hbm_to_vmem [thread:$0]  %s29_s20, 256, %s31_s22, [#allocation5], %s761_s26, %s761_s26, %s762_s27  }
   0x6   :  { %s56_s29 = sshll.u32 %s763_s28, 4  ;;  %s764_s30 = smov 64   ;;  %s57_s29 = int_to_ptr.vmem [resolvable:$true] %s56_s29 }
   0x7   :  { %s765_s6 = smov 4   ;;  %s18_s8 = sshll.u32 %s824_s0, 4  ;;  %s19_s8 = int_to_ptr.hbm [resolvable:$true] %s18_s8 }
   0x8   :  { %62 = dma.hbm_to_vmem [thread:$0]  %s55_s25, 2048, %s57_s29, [#allocation8], %s764_s30, %s764_s30, %s765_s6  }
   0x9   :  { %s766_s9 = smov [#allocation2]   ;;  %s41_s12 = sshll.u32 %s826_s2, 4  ;;  %s42_s12 = int_to_ptr.hbm [resolvable:$true] %s41_s12 }
   0xa   :  { %s20_s10 = sshll.u32 %s766_s9, 4  ;;  %s767_s13 = smov [#allocation6]   ;;  %s21_s10 = int_to_ptr.vmem [resolvable:$true] %s20_s10 }
   0xb   :  { %23 = dma.hbm_to_vmem [thread:$0]  %s19_s8, 128, %s21_s10, [#allocation3]  }
   0xc   :  { %s43_s14 = sshll.u32 %s767_s13, 4  ;;  %s68_s17 = sshll.u32 %s828_s4, 4  ;;  %s44_s14 = int_to_ptr.vmem [resolvable:$true] %s43_s14  ;;  %s69_s17 = int_to_ptr.hbm [resolvable:$true] %s68_s17 }
   0xd   :  { %49 = dma.hbm_to_vmem [thread:$0]  %s42_s12, 2048, %s44_s14, [#allocation5], %s761_s26, %s761_s26, %s762_s27  }
   0xe   :  { %s768_s0 = smov [#allocation9]  }
   0xf   :  { %s70_s18 = sshll.u32 %s768_s0, 4  ;;  %s71_s18 = int_to_ptr.vmem [resolvable:$true] %s70_s18 }
  0x10   :  { %73 = dma.hbm_to_vmem [thread:$0]  %s69_s17, 128, %s71_s18, [#allocation8]  }
  0x11   :  { %754 = dma.done.wait [#allocation3], 128  }
  0x12   :  { %755 = vsyncadd [#allocation3], 4294967168 }
  0x13   :  { %756 = dma.done.wait [#allocation5], 2304  }
  0x14   :  { %757 = vsyncadd [#allocation5], 4294964992 }
  0x15   :  { %758 = dma.done.wait [#allocation8], 2176  }
  0x16   :  { %759 = vsyncadd [#allocation8], 4294965120  ;;  %v101_v0 = vld [vmem:[#allocation4 + $0x8] sm:$0xff]  ;;  %v100_v1 = vld [vmem:[#allocation4] sm:$0xff]  ;;  %vm102_vm0 = vcmask 130048  }
  0x17   :  { %120 = vmatpush.msra.mxu0 %v101_v0  ;;  %v99_v2 = vld [vmem:[#allocation2] sm:$0xff]  ;;  %v518_v3 = vld [vmem:[#allocation6 + $0x70] sm:$0xf]  ;;  %v603_v4 = vld [vmem:[#allocation6 + $0x74] sm:$0xf0] }
  0x18   :  { %v602_v5 = vld [vmem:[#allocation6 + $0x74] sm:$0xf]  ;;  %v519_v6 = vor.u32 %v603_v4, %v518_v3  ;;  %v520_v7 = vld [vmem:[#allocation6 + $0x78] sm:$0xf0]  ;;  %v510_v8 = vld [vmem:[#allocation6 + $0x60] sm:$0xf] }
  0x19   :  { %121 = vmatpush.msra.mxu0 %v100_v1  ;;  %v601_v9 = vld [vmem:[#allocation6 + $0x64] sm:$0xf0]  ;;  %v523_v10 = vor.u32 %v602_v5, %v520_v7  ;;  %v600_v11 = vld [vmem:[#allocation6 + $0x64] sm:$0xf]  ;;  %v512_v12 = vld [vmem:[#allocation6 + $0x68] sm:$0xf0] }
  0x1a   :  { %459 = vmatmul.msk.f32.vlgmr.msra.gmra.mxu0 %vm102_vm0, %v99_v2  ;;  %265 = vmatpush.bf16.msra.mxu1 %v519_v6  ;;  %v511_v13 = vor.u32 %v601_v9, %v510_v8  ;;  %v515_v14 = vor.u32 %v600_v11, %v512_v12  ;;  %v502_v15 = vld [vmem:[#allocation6 + $0x50] sm:$0xf]  ;;  %v599_v16 = vld [vmem:[#allocation6 + $0x54] sm:$0xf0]  ;;  %v598_v17 = vld [vmem:[#allocation6 + $0x54] sm:$0xf] }
  0x1b   :  { %278 = vmatpush.bf16.msra.mxu2 %v523_v10  ;;  %v504_v18 = vld [vmem:[#allocation6 + $0x58] sm:$0xf0]  ;;  %v503_v19 = vor.u32 %v599_v16, %v502_v15  ;;  %v494_v21 = vld [vmem:[#allocation6 + $0x40] sm:$0xf]  ;;  %v597_v22 = vld [vmem:[#allocation6 + $0x44] sm:$0xf0] }
  0x1c   :  { %v507_v20 = vor.u32 %v598_v17, %v504_v18  ;;  %v596_v23 = vld [vmem:[#allocation6 + $0x44] sm:$0xf]  ;;  %v496_v24 = vld [vmem:[#allocation6 + $0x48] sm:$0xf0]  ;;  %v495_v25 = vor.u32 %v597_v22, %v494_v21  ;;  %v486_v27 = vld [vmem:[#allocation6 + $0x30] sm:$0xf] }
  0x1d   :  { %v499_v26 = vor.u32 %v596_v23, %v496_v24  ;;  %v595_v28 = vld [vmem:[#allocation6 + $0x34] sm:$0xf0]  ;;  %v594_v29 = vld [vmem:[#allocation6 + $0x34] sm:$0xf]  ;;  %v488_v30 = vld [vmem:[#allocation6 + $0x38] sm:$0xf0] }
  0x1e   :  { %266 = vmatpush.bf16.msra.mxu1 %v511_v13  ;;  %v487_v31 = vor.u32 %v595_v28, %v486_v27  ;;  %v491_v32 = vor.u32 %v594_v29, %v488_v30  ;;  %v478_v33 = vld [vmem:[#allocation6 + $0x20] sm:$0xf]  ;;  %v593_v34 = vld [vmem:[#allocation6 + $0x24] sm:$0xf0]  ;;  %v592_v36 = vld [vmem:[#allocation6 + $0x24] sm:$0xf] }
  0x1f   :  { %279 = vmatpush.bf16.msra.mxu2 %v515_v14  ;;  %v480_v37 = vld [vmem:[#allocation6 + $0x28] sm:$0xf0]  ;;  %v479_v40 = vor.u32 %v593_v34, %v478_v33  ;;  %v470_v44 = vld [vmem:[#allocation6 + $0x10] sm:$0xf]  ;;  %v591_v45 = vld [vmem:[#allocation6 + $0x14] sm:$0xf0] }
  0x20   :  { %v483_v43 = vor.u32 %v592_v36, %v480_v37  ;;  %v590_v46 = vld [vmem:[#allocation6 + $0x14] sm:$0xf]  ;;  %v472_v47 = vld [vmem:[#allocation6 + $0x18] sm:$0xf0]  ;;  %v471_v50 = vor.u32 %v591_v45, %v470_v44  ;;  %v462_v54 = vld [vmem:[#allocation6] sm:$0xf] }
  0x21   :  { %v475_v53 = vor.u32 %v590_v46, %v472_v47  ;;  %v589_v55 = vld [vmem:[#allocation6 + $0x4] sm:$0xf0]  ;;  %v588_v56 = vld [vmem:[#allocation6 + $0x4] sm:$0xf]  ;;  %v464_v57 = vld [vmem:[#allocation6 + $0x8] sm:$0xf0] }
  0x22   :  { %267 = vmatpush.bf16.msra.mxu1 %v503_v19  ;;  %v463_v60 = vor.u32 %v589_v55, %v462_v54  ;;  %v467_v62 = vor.u32 %v588_v56, %v464_v57  ;;  %v611_v7 = vld [vmem:[#allocation7 + $0x38] sm:$0xff]  ;;  %v610_v9 = vld [vmem:[#allocation7 + $0x30] sm:$0xff]  ;;  %v609_v12 = vld [vmem:[#allocation7 + $0x28] sm:$0xff] }
  0x23   :  { %280 = vmatpush.bf16.msra.mxu2 %v507_v20  ;;  %v619_v8 = vld [vmem:[#allocation7 + $0x78] sm:$0xff]  ;;  %424 = vmatpush.bf16.msra.mxu3 %v611_v7  ;;  %v618_v10 = vld [vmem:[#allocation7 + $0x70] sm:$0xff]  ;;  %v617_v13 = vld [vmem:[#allocation7 + $0x68] sm:$0xff] }
  0x24   :  { %437 = vmatpush.bf16.msrb.mxu0 %v619_v8  ;;  %v608_v16 = vld [vmem:[#allocation7 + $0x20] sm:$0xff]  ;;  %v607_v20 = vld [vmem:[#allocation7 + $0x18] sm:$0xff]  ;;  %v605_v37 = vld [vmem:[#allocation7 + $0x8] sm:$0xff] }
  0x25   :  { %v616_v17 = vld [vmem:[#allocation7 + $0x60] sm:$0xff]  ;;  %v615_v21 = vld [vmem:[#allocation7 + $0x58] sm:$0xff] }
  0x26   :  { %268 = vmatpush.bf16.msra.mxu1 %v495_v25  ;;  %v94_v22 = vld [vmem:[#allocation9] sm:$0x1]  ;;  %v95_v27 = vld [vmem:[#allocation9 + $0x1] sm:$0x1]  ;;  %v629_v54 = vld [vmem:[#allocation9 + $0x3] ss:$0 sm:$0xff] }
  0x27   :  { %281 = vmatpush.bf16.msra.mxu2 %v499_v26  ;;  %425 = vmatpush.bf16.msra.mxu3 %v610_v9  ;;  %v606_v26 = vld [vmem:[#allocation7 + $0x10] sm:$0xff] }
  0x28   :  { %438 = vmatpush.bf16.msrb.mxu0 %v618_v10 }
  0x2a   :  { %269 = vmatpush.bf16.msra.mxu1 %v487_v31 }
  0x2b   :  { %282 = vmatpush.bf16.msra.mxu2 %v491_v32  ;;  %426 = vmatpush.bf16.msra.mxu3 %v609_v12 }
  0x2c   :  { %439 = vmatpush.bf16.msrb.mxu0 %v617_v13 }
  0x2e   :  { %270 = vmatpush.bf16.msra.mxu1 %v479_v40  ;;  %v613_v40 = vld [vmem:[#allocation7 + $0x48] sm:$0xff] }
  0x2f   :  { %283 = vmatpush.bf16.msra.mxu2 %v483_v43  ;;  %427 = vmatpush.bf16.msra.mxu3 %v608_v16 }
  0x30   :  { %440 = vmatpush.bf16.msrb.mxu0 %v616_v17 }
  0x32   :  { %271 = vmatpush.bf16.msra.mxu1 %v471_v50 }
  0x33   :  { %284 = vmatpush.bf16.msra.mxu2 %v475_v53  ;;  %428 = vmatpush.bf16.msra.mxu3 %v607_v20 }
  0x34   :  { %441 = vmatpush.bf16.msrb.mxu0 %v615_v21 }
  0x36   :  { %272 = vmatpush.bf16.msra.mxu1 %v463_v60 }
  0x37   :  { %285 = vmatpush.bf16.msra.mxu2 %v467_v62  ;;  %429 = vmatpush.bf16.msra.mxu3 %v606_v26 }
  0x3b   :  { %430 = vmatpush.bf16.msra.mxu3 %v605_v37 }
  0x97   :  { %v814_v35 = vpop.f32.mrf.mxu0 }
  0x98   :  { %v126_v38 = vrot.slane %v814_v35, 4  ;;  %v132_v39 = vmul.f32 %v814_v35, %v814_v35 }
  0x9a   :  { %v127_v41 = vadd.f32 %v126_v38, %v814_v35  ;;  %v133_v42 = vrot.slane %v132_v39, 4  ;;  %v614_v38 = vld [vmem:[#allocation7 + $0x50] sm:$0xff] }
  0x9b   :  { %442 = vmatpush.bf16.msrb.mxu0 %v614_v38 }
  0x9c   :  { %v128_v48 = vrot.slane %v127_v41, 2  ;;  %v134_v49 = vadd.f32 %v133_v42, %v132_v39  ;;  %v604_v39 = vld [vmem:[#allocation7] sm:$0xff] }
  0x9d   :  { %431 = vmatpush.bf16.msra.mxu3 %v604_v39  ;;  %v97_v42 = vld [vmem:[#allocation9 + $0x2] ss:$4 sm:$0x3] }
  0x9e   :  { %v129_v51 = vadd.f32 %v128_v48, %v127_v41  ;;  %v135_v52 = vrot.slane %v134_v49, 2  ;;  %v612_v41 = vld [vmem:[#allocation7 + $0x40] sm:$0xff]  ;;  %v181_v43 = vperm.slane %v97_v42, 0  ;;  %v182_v46 = vperm.slane %v97_v42, 1 }
  0x9f   :  { %443 = vmatpush.bf16.msrb.mxu0 %v613_v40 }
  0xa0   :  { %v130_v58 = vrot.slane %v129_v51, 1  ;;  %v136_v59 = vadd.f32 %v135_v52, %v134_v49 }
  0xa2   :  { %v137_v61 = vrot.slane %v136_v59, 1  ;;  %v131_v63 = vadd.f32 %v130_v58, %v129_v51 }
  0xa3   :  { %444 = vmatpush.bf16.msrb.mxu0 %v612_v41 }
  0xa4   :  { %v138_v0 = vadd.f32 %v137_v61, %v136_v59  ;;  %v139_v1 = vmul.f32 0.125, %v131_v63 }
  0xa6   :  { %v140_v2 = vmul.f32 0.125, %v138_v0  ;;  %v141_v3 = vmul.f32 %v139_v1, %v139_v1 }
  0xa8   :  { %v142_v4 = vsub.f32 %v140_v2, %v141_v3 }
  0xaa   :  { %v143_v5 = vmax.f32 %v142_v4, 0.0 }
  0xac   :  { %v144_v6 = vadd.f32 1e-05, %v143_v5 }
  0xae   :  { %630 = vrsqrt.f32 %v144_v6  ;;  %vm151_vm2 = vweird.f32 %v144_v6 }
  0xb4   :  { %v631_v11 = vpop.eup %630 }
  0xb5   :  { %v146_v14 = vmul.f32 %v631_v11, %v144_v6  ;;  %vm152_vm1 = vweird.f32 %v631_v11 }
  0xb6   :  { %vm153_vm3 = vmor %vm151_vm2, %vm152_vm1 }
  0xb7   :  { %v147_v15 = vmul.f32 %v631_v11, %v146_v14 }
  0xb9   :  { %v148_v18 = vmul.f32 0.5, %v147_v15 }
  0xbb   :  { %v149_v19 = vsub.f32 1.5, %v148_v18 }
  0xbd   :  { %v150_v23 = vmul.f32 %v631_v11, %v149_v19 }
  0xbf   :  { %v154_v24 = vsel %vm153_vm3, %v631_v11, %v150_v23 }
  0xc0   :  { %v155_v25 = vmul.f32 %v154_v24, %v94_v22 }
  0xc2   :  { %v156_v28 = vmul.f32 %v155_v25, %v139_v1  ;;  %v158_v29 = vperm.slane %v155_v25, 0 }
  0xc4   :  { %v157_v30 = vsub.f32 %v95_v27, %v156_v28  ;;  %v159_v31 = vmul.f32 %v158_v29, %v814_v35 }
  0xc6   :  { %v160_v32 = vperm.slane %v157_v30, 0 }
  0xc8   :  { %v161_v33 = vadd.f32 %v160_v32, %v159_v31 }
  0xca   :  { %v162_v34 = vmax.f32 %v161_v33, 0.0 }
  0xcc   :  { %v163_v36 = vpack.c.bf16 %v162_v34, %v162_v34 }
  0xce   :  { %273 = vmatmul.bf16.vlgmr.msra.gmra.mxu1 %v163_v36  ;;  %286 = vmatmul.bf16.vlgmr.msra.gmra.mxu2 %v163_v36 }
 0x14b   :  { %v274_v44 = vpop.f32.mrf.mxu1 }
 0x14c   :  { %v275_v35 = vadd.f32 %v274_v44, %v181_v43 }
 0x14e   :  { %v291_v45 = vmax.f32 %v275_v35, 0.0 }
 0x150   :  { %v293_v47 = vpack.c.bf16 %v291_v45, %v291_v45 }
 0x151   :  { %v287_v48 = vpop.f32.mrf.mxu2 }
 0x152   :  { %v288_v49 = vadd.f32 %v287_v48, %v182_v46  ;;  %432 = vmatmul.bf16.vlgmr.msra.gmra.mxu3 %v293_v47 }
 0x153   :  { %v276_v50 = vpop.f32.mrf.mxu1 }
 0x154   :  { %v292_v51 = vmax.f32 %v288_v49, 0.0 }
 0x156   :  { %v294_v52 = vpack.c.bf16 %v292_v51, %v292_v51 }
 0x158   :  { %445 = vmatmul.bf16.vlgmr.msrb.gmra.mxu0 %v294_v52 }
 0x159   :  { %v289_v53 = vpop.f32.mrf.mxu2 }
 0x1d5   :  { %v433_v55 = vpop.f32.mrf.mxu3  ;;  %v446_v56 = vpop.f32.mrf.mxu0 }
 0x1d6   :  { %v434_v57 = vadd.f32 %v629_v54, %v433_v55 }
 0x1d8   :  { %v447_v58 = vadd.f32 %v446_v56, %v434_v57 }
 0x1da   :  { %632 = vtanh.f32 %v447_v58 }
 0x1dd   :  { %v435_v59 = vpop.f32.mrf.mxu3  ;;  %v448_v60 = vpop.f32.mrf.mxu0 }
 0x1e0   :  { %v633_v61 = vpop.eup %632 }
 0x1e1   :  { %451 = vst [vmem:[%s829_s5] sm:$0xff] %v633_v61 }
 0x1e2   :  { %456 = vsyncpa [#allocation3], 1 }
 0x1e3   :  { %457 = vsyncpa [#allocation5], 1 }
 0x1e4   :  { %458 = vsyncpa [#allocation8], 1 }

</bundles_post_ra>
